<compile_context>
chip_gen: v5e
topology: v5e:2x2
jax: 0.10.0
libtpu: 0.0.40
codegen_flags: <defaults>
</compile_context>

<pallas_src>
from functools import partial

import jax
import jax.numpy as jnp
from jax.experimental import pallas as pl
from jax.experimental.pallas import tpu as pltpu


def _round_up(x, m):
    return (x + m - 1) // m * m


def _lstm_kernel(T, Bp, H, x_ref, wih_ref, whh_ref, b_ref, lw_ref, lb_ref,
                 out_ref):
    """Single-invocation LSTM forward + final Linear.

    x_ref   : (T*Bp, Ip)  time-major, batch/feature-padded inputs
    wih_ref : (Ip, 4H)    input->gates weights (transposed, gate-prescaled)
    whh_ref : (H, 4H)     hidden->gates weights (transposed, gate-prescaled)
    b_ref   : (1, 4H)     bias_ih + bias_hh (gate-prescaled)
    lw_ref  : (1, H)      final linear weight
    lb_ref  : (1, 1)      final linear bias
    out_ref : (Bp, 1)     predictions (padded batch rows included)

    Gate pre-scaling (done on the host, once): columns [0:2H] and [3H:4H]
    carry gates/2 so sigmoid(g) == 0.5 + 0.5*tanh(g/2); columns [2H:3H] carry
    the plain g gate so tanh applies directly.  -> one EUP pass per step.
    """
    # Batched input projection for all T steps: one MXU matmul, bias folded in.
    # Kept as a value (8 vregs at T*Bp=64, 4H=128), not a VMEM scratch.
    proj = (jnp.dot(x_ref[...], wih_ref[...],
                    preferred_element_type=jnp.float32) + b_ref[...])

    whh = whh_ref[...]                                 # (H, 4H), loaded once
    h = jnp.zeros((Bp, H), jnp.float32)
    c = jnp.zeros((Bp, H), jnp.float32)

    # T is a static Python int -> fully unrolled straight-line recurrence with
    # static slice offsets (full LLO visibility; live state is a handful of
    # vregs at these sizes).
    # TODO(synk): for production window lengths, switch to
    # lax.fori_loop(..., unroll=4) with the projection kept in a VMEM scratch
    # and pl.multiple_of(t*Bp, 8) slice starts, to avoid the code-size /
    # vreg-pressure cliff of a full unroll.
    for t in range(T):
        # TODO(synk): keep whh weight-stationary in the MXU across the
        # recurrence (pltpu.matmul_push_rhs / matmul_acc_lhs / matmul_pop)
        # if bundle dumps show Mosaic re-pushing the (H,4H) RHS every step.
        gates = proj[t * Bp:(t + 1) * Bp, :] + jnp.dot(
            h, whh, preferred_element_type=jnp.float32)        # (Bp, 4H)

        t_all = jnp.tanh(gates)                        # single full-vreg EUP pass
        sig = 0.5 + 0.5 * t_all                        # VPU fix-up for i/f/o
        i_g = sig[:, 0 * H:1 * H]
        f_g = sig[:, 1 * H:2 * H]
        g_g = t_all[:, 2 * H:3 * H]                    # plain tanh gate
        o_g = sig[:, 3 * H:4 * H]
        c = f_g * c + i_g * g_g
        h = o_g * jnp.tanh(c)
        # NOTE: padded batch rows accumulate bias-driven h/c; harmless because
        # they are sliced off in the wrapper and never reduced over in-kernel.

    # Final Linear(H, 1): VPU multiply + lane reduction (no N=1 MXU matmul);
    # executed exactly once per call, so off any hot path.
    out_ref[...] = (jnp.sum(h * lw_ref[...], axis=-1, keepdims=True)
                    + lb_ref[...])


def prepare_params(params):
    """One-time weight prep (call once; keeps transposes/pads/scaling off the
    per-call hot path).

    Returns padded, transposed, gate-prescaled weights ready for the kernel.
    """
    H = params["w_hh"].shape[1]
    I = params["w_ih"].shape[1]
    Ip = _round_up(I, 8)

    # Per-gate-column scaling for the sigmoid-as-tanh identity:
    #   i, f, o columns -> x0.5 (tanh half-argument), g columns -> x1.0.
    scale = jnp.concatenate([
        jnp.full((2 * H,), 0.5, jnp.float32),
        jnp.ones((H,), jnp.float32),
        jnp.full((H,), 0.5, jnp.float32),
    ])                                                            # (4H,)

    wih_t = jnp.transpose(params["w_ih"], (1, 0)).astype(jnp.float32) * scale
    wih_p = jnp.zeros((Ip, 4 * H), jnp.float32).at[:I, :].set(wih_t)
    whh_p = jnp.transpose(params["w_hh"], (1, 0)).astype(jnp.float32) * scale
    bias = ((params["b_ih"] + params["b_hh"]).astype(jnp.float32)
            * scale).reshape(1, 4 * H)
    lw = params["lin_w"].reshape(1, H).astype(jnp.float32)
    lb = params["lin_b"].reshape(1, 1).astype(jnp.float32)
    return {"wih": wih_p, "whh": whh_p, "bias": bias, "lw": lw, "lb": lb}


@jax.jit
def one_class_lstm_forward(sequences, prepped):
    """sequences: [B, T, I] float32, prepped from prepare_params -> [B] preds.

    Jitted so the transpose / pad / pallas_call / output slice are one XLA
    dispatch (the surrounding data shuffling fuses instead of paying separate
    HBM round trips around a microsecond-scale kernel).
    """
    B, T, I = sequences.shape
    Ip, fourH = prepped["wih"].shape
    H = fourH // 4
    Bp = _round_up(max(B, 8), 8)        # f32 sublane granule

    # Time-major, zero-padded, flattened so rows [t*Bp:(t+1)*Bp] are all
    # (padded) batch rows of time step t.
    x_tbi = jnp.transpose(sequences, (1, 0, 2)).astype(jnp.float32)  # (T,B,I)
    x_pad = jnp.zeros((T, Bp, Ip), jnp.float32).at[:, :B, :I].set(x_tbi)
    x2d = x_pad.reshape(T * Bp, Ip)

    # Single invocation (no grid): every operand gets a full-array VMEM spec
    # and is DMA'd exactly once.
    # TODO(synk): for production sizes on v7x, add a batch-tiled grid axis with
    # dimension_semantics=("parallel",) to use both TensorCores, and tile the
    # T axis (pltpu.emit_pipeline) / set vmem_limit_bytes so the all-resident
    # footprint stays under v7x's smaller (64 MiB) VMEM.
    vmem = pl.BlockSpec(memory_space=pltpu.MemorySpace.VMEM)
    out = pl.pallas_call(
        partial(_lstm_kernel, T, Bp, H),
        out_shape=jax.ShapeDtypeStruct((Bp, 1), jnp.float32),
        in_specs=[vmem] * 6,
        out_specs=vmem,
    )(x2d, prepped["wih"], prepped["whh"], prepped["bias"],
      prepped["lw"], prepped["lb"])

    # TODO(synk): num_layers > 1 would chain this kernel layer-by-layer.
    return out[:B, 0]                                   # drop padded rows -> [B]


def _reference_forward(sequences, params):
    """Pure-JAX reference (matches nn.LSTM + Linear semantics, unscaled params)."""
    B, T, I = sequences.shape
    H = params["w_hh"].shape[1]
    wih_t = params["w_ih"].T
    whh_t = params["w_hh"].T
    bias = params["b_ih"] + params["b_hh"]

    def step(carry, x_t):
        h, c = carry
        gates = x_t @ wih_t + h @ whh_t + bias
        i_g = jax.nn.sigmoid(gates[:, 0 * H:1 * H])
        f_g = jax.nn.sigmoid(gates[:, 1 * H:2 * H])
        g_g = jnp.tanh(gates[:, 2 * H:3 * H])
        o_g = jax.nn.sigmoid(gates[:, 3 * H:4 * H])
        c = f_g * c + i_g * g_g
        h = o_g * jnp.tanh(c)
        return (h, c), None

    h0 = jnp.zeros((B, H), jnp.float32)
    c0 = jnp.zeros((B, H), jnp.float32)
    (h_T, _), _ = jax.lax.scan(step, (h0, c0),
                               jnp.transpose(sequences, (1, 0, 2)))
    return (h_T @ params["lin_w"].T + params["lin_b"])[:, 0]


def _init_params(key, input_size, hidden_size):
    """Deterministic init mimicking PyTorch's U(-1/sqrt(H), 1/sqrt(H))."""
    ks = jax.random.split(key, 6)
    s = 1.0 / jnp.sqrt(hidden_size)
    u = lambda k, shape: jax.random.uniform(k, shape, jnp.float32, -s, s)
    return {
        "w_ih": u(ks[0], (4 * hidden_size, input_size)),
        "w_hh": u(ks[1], (4 * hidden_size, hidden_size)),
        "b_ih": u(ks[2], (4 * hidden_size,)),
        "b_hh": u(ks[3], (4 * hidden_size,)),
        "lin_w": u(ks[4], (1, hidden_size)),
        "lin_b": u(ks[5], (1,)),
    }


if __name__ == "__main__":
    B, T, I, H = 4, 8, 34, 32   # batch, window, keypoint features, hidden

    key = jax.random.PRNGKey(0)
    k_x, k_p = jax.random.split(key)
    sequences = jax.random.normal(k_x, (B, T, I), jnp.float32)
    params = _init_params(k_p, I, H)

    # One-time weight prep (transposes / padding / bias fusion / gate scaling),
    # kept off the per-call hot path.
    prepped = prepare_params(params)

    preds = one_class_lstm_forward(sequences, prepped)
    preds = jax.block_until_ready(preds)

    ref = _reference_forward(sequences, params)
    assert preds.shape == (B,)
    assert jnp.allclose(preds, ref, atol=2e-4, rtol=2e-4), (preds, ref)

    print("KERNEL_OK")
</pallas_src>

<mosaic_0001>
module attributes {stable_mosaic.version = 11 : i64} {
  func.func @_lstm_kernel(%arg0: memref<64x40xf32, #tpu.memory_space<vmem>>, %arg1: memref<40x128xf32, #tpu.memory_space<vmem>>, %arg2: memref<32x128xf32, #tpu.memory_space<vmem>>, %arg3: memref<1x128xf32, #tpu.memory_space<vmem>>, %arg4: memref<1x32xf32, #tpu.memory_space<vmem>>, %arg5: memref<1x1xf32, #tpu.memory_space<vmem>>, %arg6: memref<8x1xf32, #tpu.memory_space<vmem>>) attributes {dimension_semantics = [], scalar_prefetch = 0 : i64, scratch_operands = 0 : i64, tpu.core_type = #tpu.core_type<tc>} {
    %c0 = arith.constant 0 : index
    %c0_0 = arith.constant 0 : index
    %0 = vector.load %arg0[%c0, %c0_0] : memref<64x40xf32, #tpu.memory_space<vmem>>, vector<64x40xf32>
    %c0_1 = arith.constant 0 : index
    %c0_2 = arith.constant 0 : index
    %1 = vector.load %arg1[%c0_1, %c0_2] : memref<40x128xf32, #tpu.memory_space<vmem>>, vector<40x128xf32>
    %cst = arith.constant dense<0.000000e+00> : vector<64x128xf32>
    %2 = tpu.matmul %0, %1, %cst {dimension_numbers = #tpu.dot_dimension_numbers<[1], [0], [0], [1], [0, 0, 1, 1], [], []>} : vector<64x40xf32>, vector<40x128xf32>, vector<64x128xf32> -> vector<64x128xf32>
    %c0_3 = arith.constant 0 : index
    %c0_4 = arith.constant 0 : index
    %3 = vector.load %arg3[%c0_3, %c0_4] : memref<1x128xf32, #tpu.memory_space<vmem>>, vector<1x128xf32>
    %4 = vector.broadcast %3 : vector<1x128xf32> to vector<64x128xf32>
    %5 = arith.addf %2, %4 : vector<64x128xf32>
    %c0_5 = arith.constant 0 : index
    %c0_6 = arith.constant 0 : index
    %6 = vector.load %arg2[%c0_5, %c0_6] : memref<32x128xf32, #tpu.memory_space<vmem>>, vector<32x128xf32>
    %cst_7 = arith.constant 0.000000e+00 : f32
    %7 = vector.broadcast %cst_7 : f32 to vector<8x32xf32>
    %cst_8 = arith.constant 0.000000e+00 : f32
    %8 = vector.broadcast %cst_8 : f32 to vector<8x32xf32>
    %9 = vector.extract_strided_slice %5 {offsets = [0, 0], sizes = [8, 128], strides = [1, 1]} : vector<64x128xf32> to vector<8x128xf32>
    %cst_9 = arith.constant dense<0.000000e+00> : vector<8x128xf32>
    %10 = tpu.matmul %7, %6, %cst_9 {dimension_numbers = #tpu.dot_dimension_numbers<[1], [0], [0], [1], [0, 0, 1, 1], [], []>} : vector<8x32xf32>, vector<32x128xf32>, vector<8x128xf32> -> vector<8x128xf32>
    %11 = arith.addf %9, %10 : vector<8x128xf32>
    %12 = math.tanh %11 : vector<8x128xf32>
    %cst_10 = arith.constant 5.000000e-01 : f32
    %13 = vector.broadcast %cst_10 : f32 to vector<8x128xf32>
    %14 = arith.mulf %13, %12 : vector<8x128xf32>
    %cst_11 = arith.constant 5.000000e-01 : f32
    %15 = vector.broadcast %cst_11 : f32 to vector<8x128xf32>
    %16 = arith.addf %15, %14 : vector<8x128xf32>
    %17 = vector.extract_strided_slice %16 {offsets = [0, 0], sizes = [8, 32], strides = [1, 1]} : vector<8x128xf32> to vector<8x32xf32>
    %18 = vector.extract_strided_slice %16 {offsets = [0, 32], sizes = [8, 32], strides = [1, 1]} : vector<8x128xf32> to vector<8x32xf32>
    %19 = vector.extract_strided_slice %12 {offsets = [0, 64], sizes = [8, 32], strides = [1, 1]} : vector<8x128xf32> to vector<8x32xf32>
    %20 = vector.extract_strided_slice %16 {offsets = [0, 96], sizes = [8, 32], strides = [1, 1]} : vector<8x128xf32> to vector<8x32xf32>
    %21 = arith.mulf %18, %8 : vector<8x32xf32>
    %22 = arith.mulf %17, %19 : vector<8x32xf32>
    %23 = arith.addf %21, %22 : vector<8x32xf32>
    %24 = math.tanh %23 : vector<8x32xf32>
    %25 = arith.mulf %20, %24 : vector<8x32xf32>
    %26 = vector.extract_strided_slice %5 {offsets = [8, 0], sizes = [8, 128], strides = [1, 1]} : vector<64x128xf32> to vector<8x128xf32>
    %cst_12 = arith.constant dense<0.000000e+00> : vector<8x128xf32>
    %27 = tpu.matmul %25, %6, %cst_12 {dimension_numbers = #tpu.dot_dimension_numbers<[1], [0], [0], [1], [0, 0, 1, 1], [], []>} : vector<8x32xf32>, vector<32x128xf32>, vector<8x128xf32> -> vector<8x128xf32>
    %28 = arith.addf %26, %27 : vector<8x128xf32>
    %29 = math.tanh %28 : vector<8x128xf32>
    %cst_13 = arith.constant 5.000000e-01 : f32
    %30 = vector.broadcast %cst_13 : f32 to vector<8x128xf32>
    %31 = arith.mulf %30, %29 : vector<8x128xf32>
    %cst_14 = arith.constant 5.000000e-01 : f32
    %32 = vector.broadcast %cst_14 : f32 to vector<8x128xf32>
    %33 = arith.addf %32, %31 : vector<8x128xf32>
    %34 = vector.extract_strided_slice %33 {offsets = [0, 0], sizes = [8, 32], strides = [1, 1]} : vector<8x128xf32> to vector<8x32xf32>
    %35 = vector.extract_strided_slice %33 {offsets = [0, 32], sizes = [8, 32], strides = [1, 1]} : vector<8x128xf32> to vector<8x32xf32>
    %36 = vector.extract_strided_slice %29 {offsets = [0, 64], sizes = [8, 32], strides = [1, 1]} : vector<8x128xf32> to vector<8x32xf32>
    %37 = vector.extract_strided_slice %33 {offsets = [0, 96], sizes = [8, 32], strides = [1, 1]} : vector<8x128xf32> to vector<8x32xf32>
    %38 = arith.mulf %35, %23 : vector<8x32xf32>
    %39 = arith.mulf %34, %36 : vector<8x32xf32>
    %40 = arith.addf %38, %39 : vector<8x32xf32>
    %41 = math.tanh %40 : vector<8x32xf32>
    %42 = arith.mulf %37, %41 : vector<8x32xf32>
    %43 = vector.extract_strided_slice %5 {offsets = [16, 0], sizes = [8, 128], strides = [1, 1]} : vector<64x128xf32> to vector<8x128xf32>
    %cst_15 = arith.constant dense<0.000000e+00> : vector<8x128xf32>
    %44 = tpu.matmul %42, %6, %cst_15 {dimension_numbers = #tpu.dot_dimension_numbers<[1], [0], [0], [1], [0, 0, 1, 1], [], []>} : vector<8x32xf32>, vector<32x128xf32>, vector<8x128xf32> -> vector<8x128xf32>
    %45 = arith.addf %43, %44 : vector<8x128xf32>
    %46 = math.tanh %45 : vector<8x128xf32>
    %cst_16 = arith.constant 5.000000e-01 : f32
    %47 = vector.broadcast %cst_16 : f32 to vector<8x128xf32>
    %48 = arith.mulf %47, %46 : vector<8x128xf32>
    %cst_17 = arith.constant 5.000000e-01 : f32
    %49 = vector.broadcast %cst_17 : f32 to vector<8x128xf32>
    %50 = arith.addf %49, %48 : vector<8x128xf32>
    %51 = vector.extract_strided_slice %50 {offsets = [0, 0], sizes = [8, 32], strides = [1, 1]} : vector<8x128xf32> to vector<8x32xf32>
    %52 = vector.extract_strided_slice %50 {offsets = [0, 32], sizes = [8, 32], strides = [1, 1]} : vector<8x128xf32> to vector<8x32xf32>
    %53 = vector.extract_strided_slice %46 {offsets = [0, 64], sizes = [8, 32], strides = [1, 1]} : vector<8x128xf32> to vector<8x32xf32>
    %54 = vector.extract_strided_slice %50 {offsets = [0, 96], sizes = [8, 32], strides = [1, 1]} : vector<8x128xf32> to vector<8x32xf32>
    %55 = arith.mulf %52, %40 : vector<8x32xf32>
    %56 = arith.mulf %51, %53 : vector<8x32xf32>
    %57 = arith.addf %55, %56 : vector<8x32xf32>
    %58 = math.tanh %57 : vector<8x32xf32>
    %59 = arith.mulf %54, %58 : vector<8x32xf32>
    %60 = vector.extract_strided_slice %5 {offsets = [24, 0], sizes = [8, 128], strides = [1, 1]} : vector<64x128xf32> to vector<8x128xf32>
    %cst_18 = arith.constant dense<0.000000e+00> : vector<8x128xf32>
    %61 = tpu.matmul %59, %6, %cst_18 {dimension_numbers = #tpu.dot_dimension_numbers<[1], [0], [0], [1], [0, 0, 1, 1], [], []>} : vector<8x32xf32>, vector<32x128xf32>, vector<8x128xf32> -> vector<8x128xf32>
    %62 = arith.addf %60, %61 : vector<8x128xf32>
    %63 = math.tanh %62 : vector<8x128xf32>
    %cst_19 = arith.constant 5.000000e-01 : f32
    %64 = vector.broadcast %cst_19 : f32 to vector<8x128xf32>
    %65 = arith.mulf %64, %63 : vector<8x128xf32>
    %cst_20 = arith.constant 5.000000e-01 : f32
    %66 = vector.broadcast %cst_20 : f32 to vector<8x128xf32>
    %67 = arith.addf %66, %65 : vector<8x128xf32>
    %68 = vector.extract_strided_slice %67 {offsets = [0, 0], sizes = [8, 32], strides = [1, 1]} : vector<8x128xf32> to vector<8x32xf32>
    %69 = vector.extract_strided_slice %67 {offsets = [0, 32], sizes = [8, 32], strides = [1, 1]} : vector<8x128xf32> to vector<8x32xf32>
    %70 = vector.extract_strided_slice %63 {offsets = [0, 64], sizes = [8, 32], strides = [1, 1]} : vector<8x128xf32> to vector<8x32xf32>
    %71 = vector.extract_strided_slice %67 {offsets = [0, 96], sizes = [8, 32], strides = [1, 1]} : vector<8x128xf32> to vector<8x32xf32>
    %72 = arith.mulf %69, %57 : vector<8x32xf32>
    %73 = arith.mulf %68, %70 : vector<8x32xf32>
    %74 = arith.addf %72, %73 : vector<8x32xf32>
    %75 = math.tanh %74 : vector<8x32xf32>
    %76 = arith.mulf %71, %75 : vector<8x32xf32>
    %77 = vector.extract_strided_slice %5 {offsets = [32, 0], sizes = [8, 128], strides = [1, 1]} : vector<64x128xf32> to vector<8x128xf32>
    %cst_21 = arith.constant dense<0.000000e+00> : vector<8x128xf32>
    %78 = tpu.matmul %76, %6, %cst_21 {dimension_numbers = #tpu.dot_dimension_numbers<[1], [0], [0], [1], [0, 0, 1, 1], [], []>} : vector<8x32xf32>, vector<32x128xf32>, vector<8x128xf32> -> vector<8x128xf32>
    %79 = arith.addf %77, %78 : vector<8x128xf32>
    %80 = math.tanh %79 : vector<8x128xf32>
    %cst_22 = arith.constant 5.000000e-01 : f32
    %81 = vector.broadcast %cst_22 : f32 to vector<8x128xf32>
    %82 = arith.mulf %81, %80 : vector<8x128xf32>
    %cst_23 = arith.constant 5.000000e-01 : f32
    %83 = vector.broadcast %cst_23 : f32 to vector<8x128xf32>
    %84 = arith.addf %83, %82 : vector<8x128xf32>
    %85 = vector.extract_strided_slice %84 {offsets = [0, 0], sizes = [8, 32], strides = [1, 1]} : vector<8x128xf32> to vector<8x32xf32>
    %86 = vector.extract_strided_slice %84 {offsets = [0, 32], sizes = [8, 32], strides = [1, 1]} : vector<8x128xf32> to vector<8x32xf32>
    %87 = vector.extract_strided_slice %80 {offsets = [0, 64], sizes = [8, 32], strides = [1, 1]} : vector<8x128xf32> to vector<8x32xf32>
    %88 = vector.extract_strided_slice %84 {offsets = [0, 96], sizes = [8, 32], strides = [1, 1]} : vector<8x128xf32> to vector<8x32xf32>
    %89 = arith.mulf %86, %74 : vector<8x32xf32>
    %90 = arith.mulf %85, %87 : vector<8x32xf32>
    %91 = arith.addf %89, %90 : vector<8x32xf32>
    %92 = math.tanh %91 : vector<8x32xf32>
    %93 = arith.mulf %88, %92 : vector<8x32xf32>
    %94 = vector.extract_strided_slice %5 {offsets = [40, 0], sizes = [8, 128], strides = [1, 1]} : vector<64x128xf32> to vector<8x128xf32>
    %cst_24 = arith.constant dense<0.000000e+00> : vector<8x128xf32>
    %95 = tpu.matmul %93, %6, %cst_24 {dimension_numbers = #tpu.dot_dimension_numbers<[1], [0], [0], [1], [0, 0, 1, 1], [], []>} : vector<8x32xf32>, vector<32x128xf32>, vector<8x128xf32> -> vector<8x128xf32>
    %96 = arith.addf %94, %95 : vector<8x128xf32>
    %97 = math.tanh %96 : vector<8x128xf32>
    %cst_25 = arith.constant 5.000000e-01 : f32
    %98 = vector.broadcast %cst_25 : f32 to vector<8x128xf32>
    %99 = arith.mulf %98, %97 : vector<8x128xf32>
    %cst_26 = arith.constant 5.000000e-01 : f32
    %100 = vector.broadcast %cst_26 : f32 to vector<8x128xf32>
    %101 = arith.addf %100, %99 : vector<8x128xf32>
    %102 = vector.extract_strided_slice %101 {offsets = [0, 0], sizes = [8, 32], strides = [1, 1]} : vector<8x128xf32> to vector<8x32xf32>
    %103 = vector.extract_strided_slice %101 {offsets = [0, 32], sizes = [8, 32], strides = [1, 1]} : vector<8x128xf32> to vector<8x32xf32>
    %104 = vector.extract_strided_slice %97 {offsets = [0, 64], sizes = [8, 32], strides = [1, 1]} : vector<8x128xf32> to vector<8x32xf32>
    %105 = vector.extract_strided_slice %101 {offsets = [0, 96], sizes = [8, 32], strides = [1, 1]} : vector<8x128xf32> to vector<8x32xf32>
    %106 = arith.mulf %103, %91 : vector<8x32xf32>
    %107 = arith.mulf %102, %104 : vector<8x32xf32>
    %108 = arith.addf %106, %107 : vector<8x32xf32>
    %109 = math.tanh %108 : vector<8x32xf32>
    %110 = arith.mulf %105, %109 : vector<8x32xf32>
    %111 = vector.extract_strided_slice %5 {offsets = [48, 0], sizes = [8, 128], strides = [1, 1]} : vector<64x128xf32> to vector<8x128xf32>
    %cst_27 = arith.constant dense<0.000000e+00> : vector<8x128xf32>
    %112 = tpu.matmul %110, %6, %cst_27 {dimension_numbers = #tpu.dot_dimension_numbers<[1], [0], [0], [1], [0, 0, 1, 1], [], []>} : vector<8x32xf32>, vector<32x128xf32>, vector<8x128xf32> -> vector<8x128xf32>
    %113 = arith.addf %111, %112 : vector<8x128xf32>
    %114 = math.tanh %113 : vector<8x128xf32>
    %cst_28 = arith.constant 5.000000e-01 : f32
    %115 = vector.broadcast %cst_28 : f32 to vector<8x128xf32>
    %116 = arith.mulf %115, %114 : vector<8x128xf32>
    %cst_29 = arith.constant 5.000000e-01 : f32
    %117 = vector.broadcast %cst_29 : f32 to vector<8x128xf32>
    %118 = arith.addf %117, %116 : vector<8x128xf32>
    %119 = vector.extract_strided_slice %118 {offsets = [0, 0], sizes = [8, 32], strides = [1, 1]} : vector<8x128xf32> to vector<8x32xf32>
    %120 = vector.extract_strided_slice %118 {offsets = [0, 32], sizes = [8, 32], strides = [1, 1]} : vector<8x128xf32> to vector<8x32xf32>
    %121 = vector.extract_strided_slice %114 {offsets = [0, 64], sizes = [8, 32], strides = [1, 1]} : vector<8x128xf32> to vector<8x32xf32>
    %122 = vector.extract_strided_slice %118 {offsets = [0, 96], sizes = [8, 32], strides = [1, 1]} : vector<8x128xf32> to vector<8x32xf32>
    %123 = arith.mulf %120, %108 : vector<8x32xf32>
    %124 = arith.mulf %119, %121 : vector<8x32xf32>
    %125 = arith.addf %123, %124 : vector<8x32xf32>
    %126 = math.tanh %125 : vector<8x32xf32>
    %127 = arith.mulf %122, %126 : vector<8x32xf32>
    %128 = vector.extract_strided_slice %5 {offsets = [56, 0], sizes = [8, 128], strides = [1, 1]} : vector<64x128xf32> to vector<8x128xf32>
    %cst_30 = arith.constant dense<0.000000e+00> : vector<8x128xf32>
    %129 = tpu.matmul %127, %6, %cst_30 {dimension_numbers = #tpu.dot_dimension_numbers<[1], [0], [0], [1], [0, 0, 1, 1], [], []>} : vector<8x32xf32>, vector<32x128xf32>, vector<8x128xf32> -> vector<8x128xf32>
    %130 = arith.addf %128, %129 : vector<8x128xf32>
    %131 = math.tanh %130 : vector<8x128xf32>
    %cst_31 = arith.constant 5.000000e-01 : f32
    %132 = vector.broadcast %cst_31 : f32 to vector<8x128xf32>
    %133 = arith.mulf %132, %131 : vector<8x128xf32>
    %cst_32 = arith.constant 5.000000e-01 : f32
    %134 = vector.broadcast %cst_32 : f32 to vector<8x128xf32>
    %135 = arith.addf %134, %133 : vector<8x128xf32>
    %136 = vector.extract_strided_slice %135 {offsets = [0, 0], sizes = [8, 32], strides = [1, 1]} : vector<8x128xf32> to vector<8x32xf32>
    %137 = vector.extract_strided_slice %135 {offsets = [0, 32], sizes = [8, 32], strides = [1, 1]} : vector<8x128xf32> to vector<8x32xf32>
    %138 = vector.extract_strided_slice %131 {offsets = [0, 64], sizes = [8, 32], strides = [1, 1]} : vector<8x128xf32> to vector<8x32xf32>
    %139 = vector.extract_strided_slice %135 {offsets = [0, 96], sizes = [8, 32], strides = [1, 1]} : vector<8x128xf32> to vector<8x32xf32>
    %140 = arith.mulf %137, %125 : vector<8x32xf32>
    %141 = arith.mulf %136, %138 : vector<8x32xf32>
    %142 = arith.addf %140, %141 : vector<8x32xf32>
    %143 = math.tanh %142 : vector<8x32xf32>
    %144 = arith.mulf %139, %143 : vector<8x32xf32>
    %c0_33 = arith.constant 0 : index
    %c0_34 = arith.constant 0 : index
    %145 = vector.load %arg4[%c0_33, %c0_34] : memref<1x32xf32, #tpu.memory_space<vmem>>, vector<1x32xf32>
    %146 = vector.broadcast %145 : vector<1x32xf32> to vector<8x32xf32>
    %147 = arith.mulf %144, %146 : vector<8x32xf32>
    %cst_35 = arith.constant dense<0.000000e+00> : vector<8xf32>
    %148 = vector.multi_reduction <add>, %147, %cst_35 [1] : vector<8x32xf32> to vector<8xf32>
    %149 = vector.shape_cast %148 : vector<8xf32> to vector<8x1xf32>
    %c0_36 = arith.constant 0 : index
    %c0_37 = arith.constant 0 : index
    %150 = vector.load %arg5[%c0_36, %c0_37] : memref<1x1xf32, #tpu.memory_space<vmem>>, vector<1x1xf32>
    %151 = vector.broadcast %150 : vector<1x1xf32> to vector<8x1xf32>
    %152 = arith.addf %149, %151 : vector<8x1xf32>
    %c0_38 = arith.constant 0 : index
    %c0_39 = arith.constant 0 : index
    %153 = vector.load %arg6[%c0_38, %c0_39] : memref<8x1xf32, #tpu.memory_space<vmem>>, vector<8x1xf32>
    tpu.vector_store %arg6[%c0_38, %c0_39], %152 {strides = array<i32>} : memref<8x1xf32, #tpu.memory_space<vmem>>, vector<8x1xf32>,
    return
  }
}

</mosaic_0001>

<bundles_post_ra>
// kernel: one_class_lstm_forward.1
= control target key start
LH: loop header
LB: loop body
LE: loop exit
PB: predicated region body
PF: predicated region fallthrough
CT: control target
= control target key end

     0   :  { %vm42_vm0 = vcmask 326656   ;;  %v573_v11 = vmov 0.0   ;;  %s574_s19 = smov 64   ;;  %s575_s20 = smov 32   ;;  %vm112_vm1 = vcmask 261120   ;;  %vm498_vm2 = vcmask 7168   ;;  %s785_s1 = inlined_call_operand.vmem [shape: f32[40,128], index: 1, kind: input, shape index: {}]   ;;  %s786_s3 = inlined_call_operand.vmem [shape: f32[1,128], index: 3, kind: input, shape index: {}]   ;;  %s787_s0 = inlined_call_operand.vmem [shape: f32[64,40], index: 0, kind: input, shape index: {}]   ;;  %s788_s2 = inlined_call_operand.vmem [shape: f32[32,128], index: 2, kind: input, shape index: {}]   ;;  %s789_s4 = inlined_call_operand.vmem [shape: f32[1,32], index: 4, kind: input, shape index: {}]   ;;  %s790_s5 = inlined_call_operand.<no memory space> [shape: f32[1,1], index: 5, kind: input, shape index: {}]   ;;  %s791_s6 = inlined_call_operand.vmem [shape: f32[8,1], index: 6, kind: output, shape index: {}]  }
   0x1   :  { %v37_v0 = vld [vmem:[%s785_s1 + $0x20] sm:$0xff]  ;;  %v36_v1 = vld [vmem:[%s785_s1 + $0x18] sm:$0xff]  ;;  %v35_v2 = vld [vmem:[%s785_s1 + $0x10] sm:$0xff]  ;;  %s576_s9 = smov 96  }
   0x2   :  { %519 = vmatpush.msra.mxu1 %v37_v0  ;;  %78 = vmatpush.msra.mxu0 %v37_v0  ;;  %v34_v3 = vld [vmem:[%s785_s1 + $0x8] sm:$0xff]  ;;  %v33_v4 = vld [vmem:[%s785_s1] sm:$0xff]  ;;  %v636_v7 = vld [vmem:[%s788_s2 + $0x18] sm:$0xff] }
   0x3   :  { %520 = vmatpush.msra.mxu2 %v37_v0  ;;  %521 = vmatpush.msra.mxu3 %v37_v0  ;;  %v29_v5 = vld [vmem:[%s787_s0 + $0x20] sm:$0xff]  ;;  %v642_v8 = vld [vmem:[%s788_s2 + $0x10] sm:$0xff]  ;;  %v649_v9 = vld [vmem:[%s788_s2 + $0x8] sm:$0xff] }
   0x4   :  { %522 = vmatpush.msra.mxu1 %v36_v1  ;;  %79 = vmatpush.msra.mxu0 %v36_v1  ;;  %v25_v6 = vld [vmem:[%s787_s0] sm:$0xff]  ;;  %v30_v27 = vld [vmem:[%s787_s0 + $0x28] sm:$0xff]  ;;  %v31_v46 = vld [vmem:[%s787_s0 + $0x30] sm:$0xff] }
   0x5   :  { %523 = vmatpush.msra.mxu2 %v36_v1  ;;  %524 = vmatpush.msra.mxu3 %v36_v1  ;;  %v657_v10 = vld [vmem:[%s788_s2] sm:$0xff]  ;;  %v26_v30 = vld [vmem:[%s787_s0 + $0x8] sm:$0xff]  ;;  %v32_v47 = vld [vmem:[%s787_s0 + $0x38] sm:$0xff] }
   0x6   :  { %525 = vmatpush.msra.mxu1 %v35_v2  ;;  %80 = vmatpush.msra.mxu0 %v35_v2  ;;  %v680_v14 = vld [vmem:[%s786_s3] ss:$0 sm:$0xff]  ;;  %v27_v50 = vld [vmem:[%s787_s0 + $0x10] sm:$0xff] }
   0x7   :  { %526 = vmatpush.msra.mxu2 %v35_v2  ;;  %527 = vmatpush.msra.mxu3 %v35_v2 }
   0x8   :  { %528 = vmatpush.msra.mxu1 %v34_v3  ;;  %81 = vmatpush.msra.mxu0 %v34_v3 }
   0x9   :  { %529 = vmatpush.msra.mxu2 %v34_v3  ;;  %530 = vmatpush.msra.mxu3 %v34_v3  ;;  %v28_v3 = vld [vmem:[%s787_s0 + $0x18] sm:$0xff] }
   0xa   :  { %531 = vmatpush.msra.mxu1 %v33_v4  ;;  %82 = vmatpush.msra.mxu0 %v33_v4 }
   0xb   :  { %508 = vmatmul.msk.f32.vlgmr.msra.gmra.mxu1 %vm42_vm0, %v29_v5  ;;  %504 = vmatmul.msk.f32.vlgmr.msra.gmra.mxu0 %vm42_vm0, %v25_v6 }
   0xc   :  { %128 = vmatpush.msrb.mxu1 %v636_v7  ;;  %532 = vmatpush.msra.mxu2 %v33_v4 }
   0xd   :  { %533 = vmatpush.msra.mxu3 %v33_v4  ;;  %509 = vmatmul.msk.f32.vlgmr.msra.gmra.mxu2 %vm42_vm0, %v30_v27 }
   0xe   :  { %174 = vmatpush.msrb.mxu2 %v636_v7  ;;  %129 = vmatpush.msrb.mxu1 %v642_v8 }
   0xf   :  { %220 = vmatpush.msrb.mxu3 %v636_v7 }
  0x10   :  { %175 = vmatpush.msrb.mxu2 %v642_v8  ;;  %130 = vmatpush.msrb.mxu1 %v649_v9 }
  0x11   :  { %221 = vmatpush.msrb.mxu3 %v642_v8 }
  0x12   :  { %176 = vmatpush.msrb.mxu2 %v649_v9  ;;  %131 = vmatpush.msrb.mxu1 %v657_v10 }
  0x13   :  { %222 = vmatpush.msrb.mxu3 %v649_v9  ;;  %132 = vmatmul.f32.vlgmr.msrb.gmra.mxu1 %v573_v11 }
  0x14   :  { %177 = vmatpush.msrb.mxu2 %v657_v10  ;;  %266 = vmatpush.msra.mxu1 %v636_v7 }
  0x15   :  { %223 = vmatpush.msrb.mxu3 %v657_v10  ;;  %505 = vmatmul.msk.f32.gmra.mxu0 %vm42_vm0, %v26_v30 }
  0x16   :  { %267 = vmatpush.msra.mxu1 %v642_v8  ;;  %312 = vmatpush.msra.mxu2 %v636_v7 }
  0x17   :  { %510 = vmatmul.msk.f32.vlgmr.msra.gmra.mxu3 %vm42_vm0, %v31_v46 }
  0x18   :  { %268 = vmatpush.msra.mxu1 %v649_v9  ;;  %313 = vmatpush.msra.mxu2 %v642_v8 }
  0x19   :  { %358 = vmatpush.msra.mxu3 %v636_v7 }
  0x1a   :  { %269 = vmatpush.msra.mxu1 %v657_v10  ;;  %314 = vmatpush.msra.mxu2 %v649_v9 }
  0x1b   :  { %359 = vmatpush.msra.mxu3 %v642_v8 }
  0x1c   :  { %404 = vmatpush.msrb.mxu1 %v636_v7  ;;  %315 = vmatpush.msra.mxu2 %v657_v10 }
  0x1d   :  { %360 = vmatpush.msra.mxu3 %v649_v9  ;;  %506 = vmatmul.msk.f32.gmra.mxu0 %vm42_vm0, %v27_v50 }
  0x1e   :  { %405 = vmatpush.msrb.mxu1 %v642_v8 }
  0x1f   :  { %361 = vmatpush.msra.mxu3 %v657_v10 }
  0x20   :  { %406 = vmatpush.msrb.mxu1 %v649_v9  ;;  %511 = vmatmul.msk.f32.gmra.mxu3 %vm42_vm0, %v32_v47 }
  0x22   :  { %407 = vmatpush.msrb.mxu1 %v657_v10 }
  0x25   :  { %507 = vmatmul.msk.f32.gmra.mxu0 %vm42_vm0, %v28_v3 }
  0x88   :  { %v675_v12 = vpop.f32.mrf.mxu1  ;;  %v84_v13 = vpop.f32.mrf.mxu0 }
  0x89   :  { %v85_v15 = vadd.f32 %v680_v14, %v84_v13 }
  0x90   :  { %v133_v16 = vpop.f32.mrf.mxu1  ;;  %v704_v32 = vpop.f32.mrf.mxu2 }
  0x91   :  { %v136_v17 = vadd.f32 %v133_v16, %v85_v15 }
  0x92   :  { %v87_v33 = vpop.f32.mrf.mxu0 }
  0x93   :  { %541 = vtanh.f32 %v136_v17  ;;  %v88_v34 = vadd.f32 %v680_v14, %v87_v33 }
  0x99   :  { %v542_v18 = vpop.eup %541 }
  0x9a   :  { %142 = vrot.lane.b32.xlu0 %v542_v18, %s574_s19  ;;  %v138_v19 = vmul.f32 0.5, %v542_v18  ;;  %v728_v52 = vpop.f32.mrf.mxu3  ;;  %v90_v54 = vpop.f32.mrf.mxu0 }
  0x9b   :  { %v91_v55 = vadd.f32 %v680_v14, %v90_v54 }
  0x9c   :  { %v139_v20 = vadd.f32 0.5, %v138_v19 }
  0x9e   :  { %v140_v23 = vmul.f32 0.0, %v139_v20 }
  0xa3   :  { %v730_v53 = vpop.f32.mrf.mxu3 }
 0x10c   :  { %v143_v21 = vpop.permute.xlu0 %142 }
 0x10d   :  { %v145_v22 = vmul.f32 %v143_v21, %v139_v20 }
 0x10f   :  { %147 = vrot.lane.b32.xlu0 %v145_v22, %s575_s20 }
 0x181   :  { %v148_v24 = vpop.permute.xlu0 %147 }
 0x182   :  { %v150_v25 = vadd.f32 %v148_v24, %v140_v23 }
 0x184   :  { %543 = vtanh.f32 %v150_v25 }
 0x18a   :  { %v544_v26 = vpop.eup %543 }
 0x18b   :  { %153 = vrot.lane.b32.xlu1 %v544_v26, %s574_s19 }
 0x1fd   :  { %v154_v28 = vpop.permute.xlu1 %153 }
 0x1fe   :  { %v156_v29 = vmul.f32 %v154_v28, %v139_v20 }
 0x200   :  { %158 = vrot.lane.b32.xlu1 %v156_v29, %s575_s20 }
 0x272   :  { %v159_v31 = vpop.permute.xlu1 %158 }
 0x273   :  { %512 = vmatmul.msk.f32.vlgmr.msrb.gmra.mxu2 %vm112_vm1, %v159_v31 }
 0x274   :  { %450 = vmatpush.msrb.mxu2 %v636_v7  ;;  %v93_v7 = vpop.f32.mrf.mxu0 }
 0x276   :  { %451 = vmatpush.msrb.mxu2 %v642_v8  ;;  %v94_v8 = vadd.f32 %v680_v14, %v93_v7 }
 0x278   :  { %452 = vmatpush.msrb.mxu2 %v649_v9 }
 0x27a   :  { %453 = vmatpush.msrb.mxu2 %v657_v10 }
 0x2f6   :  { %v179_v35 = vpop.f32.mrf.mxu2 }
 0x2f7   :  { %v182_v36 = vadd.f32 %v179_v35, %v88_v34 }
 0x2f9   :  { %545 = vtanh.f32 %v182_v36 }
 0x2ff   :  { %v546_v37 = vpop.eup %545 }
 0x300   :  { %188 = vrot.lane.b32.xlu2 %v546_v37, %s574_s19  ;;  %v184_v38 = vmul.f32 0.5, %v546_v37 }
 0x302   :  { %v185_v39 = vadd.f32 0.5, %v184_v38 }
 0x304   :  { %v186_v42 = vmul.f32 %v185_v39, %v150_v25  ;;  %v97_v25 = vadd.f32 %v680_v14, %v675_v12 }
 0x35a   :  { %v189_v40 = vpop.permute.xlu2 %188 }
 0x35b   :  { %v191_v41 = vmul.f32 %v189_v40, %v185_v39  ;;  %v100_v40 = vadd.f32 %v680_v14, %v704_v32 }
 0x35d   :  { %193 = vrot.lane.b32.xlu2 %v191_v41, %s575_s20 }
 0x3b7   :  { %v194_v43 = vpop.permute.xlu2 %193 }
 0x3b8   :  { %v196_v44 = vadd.f32 %v194_v43, %v186_v42 }
 0x3ba   :  { %547 = vtanh.f32 %v196_v44 }
 0x3c0   :  { %v548_v45 = vpop.eup %547 }
 0x3c1   :  { %199 = vrot.lane.b32.xlu0 %v548_v45, %s574_s19 }
 0x433   :  { %v200_v48 = vpop.permute.xlu0 %199 }
 0x434   :  { %v202_v49 = vmul.f32 %v200_v48, %v185_v39 }
 0x436   :  { %204 = vrot.lane.b32.xlu1 %v202_v49, %s575_s20 }
 0x4a8   :  { %v205_v51 = vpop.permute.xlu1 %204 }
 0x4a9   :  { %513 = vmatmul.msk.f32.vlgmr.msrb.gmra.mxu3 %vm112_vm1, %v205_v51 }
 0x52c   :  { %v225_v56 = vpop.f32.mrf.mxu3 }
 0x52d   :  { %v228_v57 = vadd.f32 %v225_v56, %v91_v55  ;;  %v103_v56 = vadd.f32 %v680_v14, %v728_v52 }
 0x52f   :  { %549 = vtanh.f32 %v228_v57 }
 0x535   :  { %v550_v58 = vpop.eup %549 }
 0x536   :  { %234 = vrot.lane.b32.xlu2 %v550_v58, %s574_s19  ;;  %v230_v59 = vmul.f32 0.5, %v550_v58 }
 0x538   :  { %v231_v60 = vadd.f32 0.5, %v230_v59 }
 0x53a   :  { %v232_v63 = vmul.f32 %v231_v60, %v196_v44 }
 0x590   :  { %v235_v61 = vpop.permute.xlu2 %234 }
 0x591   :  { %v237_v62 = vmul.f32 %v235_v61, %v231_v60 }
 0x593   :  { %239 = vrot.lane.b32.xlu0 %v237_v62, %s575_s20 }
 0x605   :  { %v240_v0 = vpop.permute.xlu0 %239 }
 0x606   :  { %v242_v1 = vadd.f32 %v240_v0, %v232_v63 }
 0x608   :  { %551 = vtanh.f32 %v242_v1 }
 0x60e   :  { %v552_v2 = vpop.eup %551 }
 0x60f   :  { %245 = vrot.lane.b32.xlu1 %v552_v2, %s574_s19 }
 0x681   :  { %v246_v4 = vpop.permute.xlu1 %245 }
 0x682   :  { %v248_v5 = vmul.f32 %v246_v4, %v231_v60 }
 0x684   :  { %250 = vrot.lane.b32.xlu2 %v248_v5, %s575_s20 }
 0x6de   :  { %v251_v6 = vpop.permute.xlu2 %250 }
 0x6df   :  { %514 = vmatmul.msk.f32.vlgmr.msra.gmra.mxu1 %vm112_vm1, %v251_v6  ;;  %v106_v6 = vadd.f32 %v680_v14, %v730_v53 }
 0x75c   :  { %v271_v9 = vpop.f32.mrf.mxu1 }
 0x75d   :  { %v274_v10 = vadd.f32 %v271_v9, %v94_v8 }
 0x75f   :  { %553 = vtanh.f32 %v274_v10 }
 0x765   :  { %v554_v11 = vpop.eup %553 }
 0x766   :  { %280 = vrot.lane.b32.xlu0 %v554_v11, %s574_s19  ;;  %v276_v13 = vmul.f32 0.5, %v554_v11 }
 0x768   :  { %v277_v15 = vadd.f32 0.5, %v276_v13 }
 0x76a   :  { %v278_v18 = vmul.f32 %v277_v15, %v242_v1 }
 0x7d8   :  { %v281_v16 = vpop.permute.xlu0 %280 }
 0x7d9   :  { %v283_v17 = vmul.f32 %v281_v16, %v277_v15  ;;  %v539_v16 = vld [vmem:[%s789_s4] ss:$0 sm:$0xff] }
 0x7db   :  { %285 = vrot.lane.b32.xlu1 %v283_v17, %s575_s20 }
 0x84d   :  { %v286_v19 = vpop.permute.xlu1 %285 }
 0x84e   :  { %v288_v20 = vadd.f32 %v286_v19, %v278_v18 }
 0x850   :  { %555 = vtanh.f32 %v288_v20 }
 0x856   :  { %v556_v21 = vpop.eup %555 }
 0x857   :  { %291 = vrot.lane.b32.xlu2 %v556_v21, %s574_s19 }
 0x8b1   :  { %v292_v22 = vpop.permute.xlu2 %291 }
 0x8b2   :  { %v294_v23 = vmul.f32 %v292_v22, %v277_v15 }
 0x8b4   :  { %296 = vrot.lane.b32.xlu0 %v294_v23, %s575_s20  ;;  %v11_v23 = vstv %s790_s5 }
 0x8b5   :  { %12 = vst [vmem:[#allocation2] sm:$0x1] %v11_v23 }
 0x926   :  { %v297_v24 = vpop.permute.xlu0 %296 }
 0x927   :  { %515 = vmatmul.msk.f32.vlgmr.msra.gmra.mxu2 %vm112_vm1, %v297_v24 }
 0x9aa   :  { %v317_v26 = vpop.f32.mrf.mxu2 }
 0x9ab   :  { %v320_v27 = vadd.f32 %v317_v26, %v97_v25  ;;  %v540_v26 = vld [vmem:[#allocation2] ss:$0 sm:$0xff] }
 0x9ad   :  { %557 = vtanh.f32 %v320_v27 }
 0x9b3   :  { %v558_v28 = vpop.eup %557 }
 0x9b4   :  { %326 = vrot.lane.b32.xlu1 %v558_v28, %s574_s19  ;;  %v322_v29 = vmul.f32 0.5, %v558_v28 }
 0x9b6   :  { %v323_v30 = vadd.f32 0.5, %v322_v29 }
 0x9b8   :  { %v324_v34 = vmul.f32 %v323_v30, %v288_v20 }
 0xa26   :  { %v327_v31 = vpop.permute.xlu1 %326 }
 0xa27   :  { %v329_v33 = vmul.f32 %v327_v31, %v323_v30 }
 0xa29   :  { %331 = vrot.lane.b32.xlu2 %v329_v33, %s575_s20 }
 0xa83   :  { %v332_v35 = vpop.permute.xlu2 %331 }
 0xa84   :  { %v334_v36 = vadd.f32 %v332_v35, %v324_v34 }
 0xa86   :  { %559 = vtanh.f32 %v334_v36 }
 0xa8c   :  { %v560_v37 = vpop.eup %559 }
 0xa8d   :  { %337 = vrot.lane.b32.xlu0 %v560_v37, %s574_s19 }
 0xaff   :  { %v338_v12 = vpop.permute.xlu0 %337 }
 0xb00   :  { %v340_v38 = vmul.f32 %v338_v12, %v323_v30 }
 0xb02   :  { %342 = vrot.lane.b32.xlu1 %v340_v38, %s575_s20 }
 0xb74   :  { %v343_v39 = vpop.permute.xlu1 %342 }
 0xb75   :  { %516 = vmatmul.msk.f32.vlgmr.msra.gmra.mxu3 %vm112_vm1, %v343_v39 }
 0xbf8   :  { %v363_v41 = vpop.f32.mrf.mxu3 }
 0xbf9   :  { %v366_v42 = vadd.f32 %v363_v41, %v100_v40 }
 0xbfb   :  { %561 = vtanh.f32 %v366_v42 }
 0xc01   :  { %v562_v43 = vpop.eup %561 }
 0xc02   :  { %372 = vrot.lane.b32.xlu2 %v562_v43, %s574_s19  ;;  %v368_v44 = vmul.f32 0.5, %v562_v43 }
 0xc04   :  { %v369_v45 = vadd.f32 0.5, %v368_v44 }
 0xc06   :  { %v370_v48 = vmul.f32 %v369_v45, %v334_v36 }
 0xc5c   :  { %v373_v46 = vpop.permute.xlu2 %372 }
 0xc5d   :  { %v375_v47 = vmul.f32 %v373_v46, %v369_v45 }
 0xc5f   :  { %377 = vrot.lane.b32.xlu0 %v375_v47, %s575_s20 }
 0xcd1   :  { %v378_v49 = vpop.permute.xlu0 %377 }
 0xcd2   :  { %v380_v50 = vadd.f32 %v378_v49, %v370_v48 }
 0xcd4   :  { %563 = vtanh.f32 %v380_v50 }
 0xcda   :  { %v564_v51 = vpop.eup %563 }
 0xcdb   :  { %383 = vrot.lane.b32.xlu1 %v564_v51, %s574_s19 }
 0xd4d   :  { %v384_v32 = vpop.permute.xlu1 %383 }
 0xd4e   :  { %v386_v54 = vmul.f32 %v384_v32, %v369_v45 }
 0xd50   :  { %388 = vrot.lane.b32.xlu2 %v386_v54, %s575_s20 }
 0xdaa   :  { %v389_v55 = vpop.permute.xlu2 %388 }
 0xdab   :  { %517 = vmatmul.msk.f32.vlgmr.msrb.gmra.mxu1 %vm112_vm1, %v389_v55 }
 0xe28   :  { %v409_v57 = vpop.f32.mrf.mxu1 }
 0xe29   :  { %v412_v58 = vadd.f32 %v409_v57, %v103_v56 }
 0xe2b   :  { %565 = vtanh.f32 %v412_v58 }
 0xe31   :  { %v566_v59 = vpop.eup %565 }
 0xe32   :  { %418 = vrot.lane.b32.xlu0 %v566_v59, %s574_s19  ;;  %v414_v60 = vmul.f32 0.5, %v566_v59 }
 0xe34   :  { %v415_v61 = vadd.f32 0.5, %v414_v60 }
 0xe36   :  { %v416_v0 = vmul.f32 %v415_v61, %v380_v50 }
 0xea4   :  { %v419_v62 = vpop.permute.xlu0 %418 }
 0xea5   :  { %v421_v63 = vmul.f32 %v419_v62, %v415_v61 }
 0xea7   :  { %423 = vrot.lane.b32.xlu1 %v421_v63, %s575_s20 }
 0xf19   :  { %v424_v1 = vpop.permute.xlu1 %423 }
 0xf1a   :  { %v426_v2 = vadd.f32 %v424_v1, %v416_v0 }
 0xf1c   :  { %567 = vtanh.f32 %v426_v2 }
 0xf22   :  { %v568_v3 = vpop.eup %567 }
 0xf23   :  { %429 = vrot.lane.b32.xlu2 %v568_v3, %s574_s19 }
 0xf7d   :  { %v430_v52 = vpop.permute.xlu2 %429 }
 0xf7e   :  { %v432_v4 = vmul.f32 %v430_v52, %v415_v61 }
 0xf80   :  { %434 = vrot.lane.b32.xlu0 %v432_v4, %s575_s20 }
 0xff2   :  { %v435_v5 = vpop.permute.xlu0 %434 }
 0xff3   :  { %518 = vmatmul.msk.f32.vlgmr.msrb.gmra.mxu2 %vm112_vm1, %v435_v5 }
0x1076   :  { %v455_v7 = vpop.f32.mrf.mxu2 }
0x1077   :  { %v458_v8 = vadd.f32 %v455_v7, %v106_v6 }
0x1079   :  { %569 = vtanh.f32 %v458_v8 }
0x107f   :  { %v570_v9 = vpop.eup %569 }
0x1080   :  { %464 = vrot.lane.b32.xlu1 %v570_v9, %s574_s19  ;;  %v460_v10 = vmul.f32 0.5, %v570_v9 }
0x1082   :  { %v461_v11 = vadd.f32 0.5, %v460_v10 }
0x1084   :  { %v462_v17 = vmul.f32 %v461_v11, %v426_v2 }
0x1088   :  { %482 = vrot.lane.b32.xlu1 %v539_v16, %s576_s9 }
0x10f2   :  { %v465_v13 = vpop.permute.xlu1 %464 }
0x10f3   :  { %v467_v15 = vmul.f32 %v465_v13, %v461_v11 }
0x10f5   :  { %469 = vrot.lane.b32.xlu2 %v467_v15, %s575_s20 }
0x10fa   :  { %v483_v20 = vpop.permute.xlu1 %482 }
0x114f   :  { %v470_v14 = vpop.permute.xlu2 %469 }
0x1150   :  { %v472_v53 = vadd.f32 %v470_v14, %v462_v17 }
0x1152   :  { %571 = vtanh.f32 %v472_v53 }
0x1158   :  { %v572_v18 = vpop.eup %571 }
0x1159   :  { %475 = vrot.lane.b32.xlu0 %v572_v18, %s574_s19 }
0x11cb   :  { %v476_v19 = vpop.permute.xlu0 %475 }
0x11cc   :  { %v478_v21 = vmul.f32 %v476_v19, %v461_v11 }
0x11ce   :  { %v485_v22 = vmul.f32 %v483_v20, %v478_v21 }
0x11d0   :  { %487 = vrot.lane.b32.xlu2 %v485_v22, %s575_s20 }
0x122a   :  { %v488_v24 = vpop.permute.xlu2 %487 }
0x122b   :  { %v490_v25 = vsel %vm112_vm1, %v488_v24, 0.0 }
0x122c   :  { %491 = vadd.xlane.f32.xlu0 %v490_v25 }
0x129f   :  { %v492_v27 = vpop.xlane.xlu0 %491 }
0x12a0   :  { %v497_v28 = vadd.f32 %v540_v26, %v492_v27 }
0x12a2   :  { %499 = vst.msk [vmem:[%s791_s6] sm:$0xff] %vm498_vm2, %v497_v28 }

</bundles_post_ra>
